<compile_context>
chip_gen: v5e
topology: v5e:2x2
jax: 0.10.0
libtpu: 0.0.40
codegen_flags: <defaults>
</compile_context>

<pallas_src>
import jax
import jax.numpy as jnp
from jax.experimental import pallas as pl
from jax.experimental.pallas import tpu as pltpu

SCALING = 0.1  # LoRA scaling from the PyTorch module


# ---------------------------------------------------------------------------
# Tile-size helper
# ---------------------------------------------------------------------------
def _pick_lane_tile(p, per_lane_bytes, cap=2048, budget=40 * 2 ** 20):
    """Largest multiple of 128 dividing p (p itself a multiple of 128), <= cap,
    whose double-buffered per-step working set fits `budget` bytes."""
    best = 128
    t = 128
    limit = min(p, cap)
    while t <= limit:
        if p % t == 0 and 2 * t * per_lane_bytes <= budget:
            best = t
        t += 128
    return best


# ---------------------------------------------------------------------------
# Pallas kernel: complex contraction 'bip,iop->bop' (p = lane-dense modes axis)
# ---------------------------------------------------------------------------
def compl_mul2d_kernel(x_ref, w_ref, o_ref):
    # x_ref: [2, B, Cin, TP]   (axis 0 = real / imag)
    # w_ref: [2, Cin, Cout, TP]
    # o_ref: [2, B, Cout, TP]  (f32)
    _, b, cin, tp = x_ref.shape
    cout = w_ref.shape[2]

    acc_r = jnp.zeros((b, cout, tp), jnp.float32)
    acc_i = jnp.zeros((b, cout, tp), jnp.float32)

    # Vectorized over the full [B, Cout, TP] output block (Cout on sublanes,
    # TP on lanes): every MAC is a full-width VPU op, stores are unmasked.
    for i in range(cin):
        xr = x_ref[0, :, i:i + 1, :].astype(jnp.float32)   # [B, 1, TP]
        xi = x_ref[1, :, i:i + 1, :].astype(jnp.float32)
        wr = w_ref[0, i:i + 1, :, :].astype(jnp.float32)   # [1, Cout, TP]
        wi = w_ref[1, i:i + 1, :, :].astype(jnp.float32)
        acc_r = acc_r + xr * wr - xi * wi
        acc_i = acc_i + xr * wi + xi * wr

    o_ref[0] = acc_r
    o_ref[1] = acc_i


def compl_mul2d_pallas(x_ri, w_ri, *, lane_cap=2048, vmem_budget=40 * 2 ** 20):
    """x_ri: [2, B, Cin, P], w_ri: [2, Cin, Cout, P]; P a multiple of 128.
    Returns f32 [2, B, Cout, P] (real / imag)."""
    _, B, Cin, P = x_ri.shape
    Cout = w_ri.shape[2]
    in_item = jnp.dtype(x_ri.dtype).itemsize

    # Bytes per lane of TP across all blocks resident in one pipeline stage.
    per_lane_bytes = (in_item * (2 * B * Cin + 2 * Cin * Cout)
                      + 4 * (2 * B * Cout))
    TP = _pick_lane_tile(P, per_lane_bytes, cap=lane_cap, budget=vmem_budget)
    grid = (P // TP,)

    x_spec = pl.BlockSpec((2, B, Cin, TP), lambda p: (0, 0, 0, p))
    w_spec = pl.BlockSpec((2, Cin, Cout, TP), lambda p: (0, 0, 0, p))
    o_spec = pl.BlockSpec((2, B, Cout, TP), lambda p: (0, 0, 0, p))

    cost = pl.CostEstimate(
        flops=8 * B * Cin * Cout * P,            # 4 mul + 4 add per complex MAC
        transcendentals=0,
        bytes_accessed=(x_ri.size * in_item + w_ri.size * in_item
                        + 2 * B * Cout * P * 4),  # x and w streamed exactly once
    )

    return pl.pallas_call(
        compl_mul2d_kernel,
        out_shape=jax.ShapeDtypeStruct((2, B, Cout, P), jnp.float32),
        grid=grid,
        in_specs=[x_spec, w_spec],
        out_specs=o_spec,
        compiler_params=pltpu.CompilerParams(
            dimension_semantics=("parallel",),
            # 48 MiB: lifts v5e's 16 MiB scoped default, leaves headroom inside
            # v7x's 64 MiB physical VMEM, comfortable on v6e's 128 MiB.
            vmem_limit_bytes=48 * 1024 * 1024,
        ),
        cost_estimate=cost,
    )(x_ri, w_ri)


# ---------------------------------------------------------------------------
# Parameter construction (deterministic, synthetic; mirrors module __init__)
# ---------------------------------------------------------------------------
def init_params(key, in_channels, out_channels, modes1, modes2, rank):
    scale = 1.0 / (in_channels * out_channels)
    ks = jax.random.split(key, 12)

    def crand(kr, ki, shape):   # uniform [0,1) real & imag, like torch.rand cfloat
        return (jax.random.uniform(kr, shape, jnp.float32)
                + 1j * jax.random.uniform(ki, shape, jnp.float32)).astype(jnp.complex64)

    def crandn(kr, ki, shape):  # standard-normal real & imag, like torch.randn cfloat
        return (jax.random.normal(kr, shape, jnp.float32)
                + 1j * jax.random.normal(ki, shape, jnp.float32)).astype(jnp.complex64)

    wshape = (in_channels, out_channels, modes1, modes2)
    return {
        "weights1": scale * crand(ks[0], ks[1], wshape),
        "weights2": scale * crand(ks[2], ks[3], wshape),
        "lora1_A": 0.02 * crandn(ks[4], ks[5], (rank, in_channels)),
        "lora1_B": 0.02 * crandn(ks[6], ks[7], (out_channels, rank, modes1, modes2)),
        "lora2_A": 0.02 * crandn(ks[8], ks[9], (rank, in_channels)),
        "lora2_B": 0.02 * crandn(ks[10], ks[11], (out_channels, rank, modes1, modes2)),
    }


def get_lora_weights(lora_A, lora_B):
    # [rank, Cin] x [Cout, rank, m1, m2] -> [Cin, Cout, m1, m2], scaled.
    return jnp.einsum("ri,orxy->ioxy", lora_A, lora_B) * SCALING


# ---------------------------------------------------------------------------
# Forward pass
# ---------------------------------------------------------------------------
def spectral_conv2d_lora_forward(x, params, modes1, modes2, out_channels,
                                 compute_dtype=jnp.float32):
    B, Cin, H, W = x.shape
    Wf = W // 2 + 1
    m1, m2 = modes1, modes2
    mm = m1 * m2

    x_ft = jnp.fft.rfft2(x, axes=(-2, -1)).astype(jnp.complex64)

    w1 = params["weights1"] + get_lora_weights(params["lora1_A"], params["lora1_B"])
    w2 = params["weights2"] + get_lora_weights(params["lora2_A"], params["lora2_B"])

    # Pack BOTH frequency blocks into one lane-dense trailing axis, pad once,
    # then split real/imag in a single pass (one leading size-2 axis).
    P0 = 2 * mm
    P = ((P0 + 127) // 128) * 128
    xb = jnp.concatenate(
        [x_ft[:, :, :m1, :m2].reshape(B, Cin, mm),
         x_ft[:, :, H - m1:, :m2].reshape(B, Cin, mm)], axis=-1)          # [B,Cin,P0]
    wb = jnp.concatenate(
        [w1.reshape(Cin, out_channels, mm),
         w2.reshape(Cin, out_channels, mm)], axis=-1)                     # [Cin,Cout,P0]
    xb = jnp.pad(xb, ((0, 0), (0, 0), (0, P - P0)))
    wb = jnp.pad(wb, ((0, 0), (0, 0), (0, P - P0)))

    x_ri = jnp.stack([xb.real, xb.imag], axis=0).astype(compute_dtype)    # [2,B,Cin,P]
    w_ri = jnp.stack([wb.real, wb.imag], axis=0).astype(compute_dtype)    # [2,Cin,Cout,P]

    out_ri = compl_mul2d_pallas(x_ri, w_ri)                               # [2,B,Cout,P]
    out_c = (out_ri[0, ..., :P0] + 1j * out_ri[1, ..., :P0]).astype(jnp.complex64)
    blk1 = out_c[..., :mm].reshape(B, out_channels, m1, m2)
    blk2 = out_c[..., mm:].reshape(B, out_channels, m1, m2)

    out_ft = jnp.zeros((B, out_channels, H, Wf), jnp.complex64)
    out_ft = out_ft.at[:, :, :m1, :m2].set(blk1)
    out_ft = out_ft.at[:, :, H - m1:, :m2].set(blk2)

    return jnp.fft.irfft2(out_ft, s=(H, W), axes=(-2, -1))


# Pure-JAX reference (for correctness check of the Pallas hot path).
def reference_forward(x, params, modes1, modes2, out_channels):
    B, Cin, H, W = x.shape
    Wf = W // 2 + 1
    x_ft = jnp.fft.rfft2(x, axes=(-2, -1)).astype(jnp.complex64)
    w1 = params["weights1"] + get_lora_weights(params["lora1_A"], params["lora1_B"])
    w2 = params["weights2"] + get_lora_weights(params["lora2_A"], params["lora2_B"])
    out_ft = jnp.zeros((B, out_channels, H, Wf), jnp.complex64)
    out_ft = out_ft.at[:, :, :modes1, :modes2].set(
        jnp.einsum("bixy,ioxy->boxy", x_ft[:, :, :modes1, :modes2], w1))
    out_ft = out_ft.at[:, :, H - modes1:, :modes2].set(
        jnp.einsum("bixy,ioxy->boxy", x_ft[:, :, H - modes1:, :modes2], w2))
    return jnp.fft.irfft2(out_ft, s=(H, W), axes=(-2, -1))


if __name__ == "__main__":
    B, Cin, Cout = 2, 4, 4
    H = W = 16
    modes1 = modes2 = 4
    rank = 4

    key = jax.random.PRNGKey(0)
    k_x, k_p = jax.random.split(key)
    x = jax.random.normal(k_x, (B, Cin, H, W), jnp.float32)
    params = init_params(k_p, Cin, Cout, modes1, modes2, rank)

    fwd = jax.jit(lambda xx: spectral_conv2d_lora_forward(xx, params, modes1, modes2, Cout))
    y = fwd(x)
    jax.block_until_ready(y)

    y_ref = reference_forward(x, params, modes1, modes2, Cout)
    assert y.shape == (B, Cout, H, W)
    assert jnp.allclose(y, y_ref, atol=1e-4, rtol=1e-4), "Pallas output mismatch"

    print("KERNEL_OK")
</pallas_src>

<mosaic_0001>
module attributes {stable_mosaic.version = 11 : i64} {
  func.func @compl_mul2d_kernel(%arg0: i32, %arg1: memref<2x2x4x128xf32, #tpu.memory_space<vmem>>, %arg2: memref<2x4x4x128xf32, #tpu.memory_space<vmem>>, %arg3: memref<2x2x4x128xf32, #tpu.memory_space<vmem>>) attributes {dimension_semantics = [#tpu.dimension_semantics<parallel>], iteration_bounds = array<i64: 1>, scalar_prefetch = 0 : i64, scratch_operands = 0 : i64, tpu.core_type = #tpu.core_type<tc>, window_params = [{transform_indices = @transform_0, window_bounds = array<i64: 2, 2, 4, 128>}, {transform_indices = @transform_1, window_bounds = array<i64: 2, 4, 4, 128>}, {transform_indices = @transform_2, window_bounds = array<i64: 2, 2, 4, 128>}]} {
    %cst = arith.constant 0.000000e+00 : f32
    %0 = vector.broadcast %cst : f32 to vector<2x4x128xf32>
    %cst_0 = arith.constant 0.000000e+00 : f32
    %1 = vector.broadcast %cst_0 : f32 to vector<2x4x128xf32>
    %c0 = arith.constant 0 : index
    %c0_1 = arith.constant 0 : index
    %c0_2 = arith.constant 0 : index
    %c0_3 = arith.constant 0 : index
    %2 = vector.load %arg1[%c0, %c0_1, %c0_2, %c0_3] : memref<2x2x4x128xf32, #tpu.memory_space<vmem>>, vector<1x2x1x128xf32>
    %3 = vector.shape_cast %2 : vector<1x2x1x128xf32> to vector<2x1x128xf32>
    %c1 = arith.constant 1 : index
    %c0_4 = arith.constant 0 : index
    %c0_5 = arith.constant 0 : index
    %c0_6 = arith.constant 0 : index
    %4 = vector.load %arg1[%c1, %c0_4, %c0_5, %c0_6] : memref<2x2x4x128xf32, #tpu.memory_space<vmem>>, vector<1x2x1x128xf32>
    %5 = vector.shape_cast %4 : vector<1x2x1x128xf32> to vector<2x1x128xf32>
    %c0_7 = arith.constant 0 : index
    %c0_8 = arith.constant 0 : index
    %c0_9 = arith.constant 0 : index
    %c0_10 = arith.constant 0 : index
    %6 = vector.load %arg2[%c0_7, %c0_8, %c0_9, %c0_10] : memref<2x4x4x128xf32, #tpu.memory_space<vmem>>, vector<1x1x4x128xf32>
    %7 = vector.shape_cast %6 : vector<1x1x4x128xf32> to vector<1x4x128xf32>
    %c1_11 = arith.constant 1 : index
    %c0_12 = arith.constant 0 : index
    %c0_13 = arith.constant 0 : index
    %c0_14 = arith.constant 0 : index
    %8 = vector.load %arg2[%c1_11, %c0_12, %c0_13, %c0_14] : memref<2x4x4x128xf32, #tpu.memory_space<vmem>>, vector<1x1x4x128xf32>
    %9 = vector.shape_cast %8 : vector<1x1x4x128xf32> to vector<1x4x128xf32>
    %10 = vector.broadcast %3 : vector<2x1x128xf32> to vector<2x4x128xf32>
    %11 = vector.broadcast %7 : vector<1x4x128xf32> to vector<2x4x128xf32>
    %12 = arith.mulf %10, %11 : vector<2x4x128xf32>
    %13 = arith.addf %0, %12 : vector<2x4x128xf32>
    %14 = vector.broadcast %5 : vector<2x1x128xf32> to vector<2x4x128xf32>
    %15 = vector.broadcast %9 : vector<1x4x128xf32> to vector<2x4x128xf32>
    %16 = arith.mulf %14, %15 : vector<2x4x128xf32>
    %17 = arith.subf %13, %16 : vector<2x4x128xf32>
    %18 = vector.broadcast %3 : vector<2x1x128xf32> to vector<2x4x128xf32>
    %19 = vector.broadcast %9 : vector<1x4x128xf32> to vector<2x4x128xf32>
    %20 = arith.mulf %18, %19 : vector<2x4x128xf32>
    %21 = arith.addf %1, %20 : vector<2x4x128xf32>
    %22 = vector.broadcast %5 : vector<2x1x128xf32> to vector<2x4x128xf32>
    %23 = vector.broadcast %7 : vector<1x4x128xf32> to vector<2x4x128xf32>
    %24 = arith.mulf %22, %23 : vector<2x4x128xf32>
    %25 = arith.addf %21, %24 : vector<2x4x128xf32>
    %c0_15 = arith.constant 0 : index
    %c0_16 = arith.constant 0 : index
    %c1_17 = arith.constant 1 : index
    %c0_18 = arith.constant 0 : index
    %26 = vector.load %arg1[%c0_15, %c0_16, %c1_17, %c0_18] : memref<2x2x4x128xf32, #tpu.memory_space<vmem>>, vector<1x2x1x128xf32>
    %27 = vector.shape_cast %26 : vector<1x2x1x128xf32> to vector<2x1x128xf32>
    %c1_19 = arith.constant 1 : index
    %c0_20 = arith.constant 0 : index
    %c1_21 = arith.constant 1 : index
    %c0_22 = arith.constant 0 : index
    %28 = vector.load %arg1[%c1_19, %c0_20, %c1_21, %c0_22] : memref<2x2x4x128xf32, #tpu.memory_space<vmem>>, vector<1x2x1x128xf32>
    %29 = vector.shape_cast %28 : vector<1x2x1x128xf32> to vector<2x1x128xf32>
    %c0_23 = arith.constant 0 : index
    %c1_24 = arith.constant 1 : index
    %c0_25 = arith.constant 0 : index
    %c0_26 = arith.constant 0 : index
    %30 = vector.load %arg2[%c0_23, %c1_24, %c0_25, %c0_26] : memref<2x4x4x128xf32, #tpu.memory_space<vmem>>, vector<1x1x4x128xf32>
    %31 = vector.shape_cast %30 : vector<1x1x4x128xf32> to vector<1x4x128xf32>
    %c1_27 = arith.constant 1 : index
    %c1_28 = arith.constant 1 : index
    %c0_29 = arith.constant 0 : index
    %c0_30 = arith.constant 0 : index
    %32 = vector.load %arg2[%c1_27, %c1_28, %c0_29, %c0_30] : memref<2x4x4x128xf32, #tpu.memory_space<vmem>>, vector<1x1x4x128xf32>
    %33 = vector.shape_cast %32 : vector<1x1x4x128xf32> to vector<1x4x128xf32>
    %34 = vector.broadcast %27 : vector<2x1x128xf32> to vector<2x4x128xf32>
    %35 = vector.broadcast %31 : vector<1x4x128xf32> to vector<2x4x128xf32>
    %36 = arith.mulf %34, %35 : vector<2x4x128xf32>
    %37 = arith.addf %17, %36 : vector<2x4x128xf32>
    %38 = vector.broadcast %29 : vector<2x1x128xf32> to vector<2x4x128xf32>
    %39 = vector.broadcast %33 : vector<1x4x128xf32> to vector<2x4x128xf32>
    %40 = arith.mulf %38, %39 : vector<2x4x128xf32>
    %41 = arith.subf %37, %40 : vector<2x4x128xf32>
    %42 = vector.broadcast %27 : vector<2x1x128xf32> to vector<2x4x128xf32>
    %43 = vector.broadcast %33 : vector<1x4x128xf32> to vector<2x4x128xf32>
    %44 = arith.mulf %42, %43 : vector<2x4x128xf32>
    %45 = arith.addf %25, %44 : vector<2x4x128xf32>
    %46 = vector.broadcast %29 : vector<2x1x128xf32> to vector<2x4x128xf32>
    %47 = vector.broadcast %31 : vector<1x4x128xf32> to vector<2x4x128xf32>
    %48 = arith.mulf %46, %47 : vector<2x4x128xf32>
    %49 = arith.addf %45, %48 : vector<2x4x128xf32>
    %c0_31 = arith.constant 0 : index
    %c0_32 = arith.constant 0 : index
    %c2 = arith.constant 2 : index
    %c0_33 = arith.constant 0 : index
    %50 = vector.load %arg1[%c0_31, %c0_32, %c2, %c0_33] : memref<2x2x4x128xf32, #tpu.memory_space<vmem>>, vector<1x2x1x128xf32>
    %51 = vector.shape_cast %50 : vector<1x2x1x128xf32> to vector<2x1x128xf32>
    %c1_34 = arith.constant 1 : index
    %c0_35 = arith.constant 0 : index
    %c2_36 = arith.constant 2 : index
    %c0_37 = arith.constant 0 : index
    %52 = vector.load %arg1[%c1_34, %c0_35, %c2_36, %c0_37] : memref<2x2x4x128xf32, #tpu.memory_space<vmem>>, vector<1x2x1x128xf32>
    %53 = vector.shape_cast %52 : vector<1x2x1x128xf32> to vector<2x1x128xf32>
    %c0_38 = arith.constant 0 : index
    %c2_39 = arith.constant 2 : index
    %c0_40 = arith.constant 0 : index
    %c0_41 = arith.constant 0 : index
    %54 = vector.load %arg2[%c0_38, %c2_39, %c0_40, %c0_41] : memref<2x4x4x128xf32, #tpu.memory_space<vmem>>, vector<1x1x4x128xf32>
    %55 = vector.shape_cast %54 : vector<1x1x4x128xf32> to vector<1x4x128xf32>
    %c1_42 = arith.constant 1 : index
    %c2_43 = arith.constant 2 : index
    %c0_44 = arith.constant 0 : index
    %c0_45 = arith.constant 0 : index
    %56 = vector.load %arg2[%c1_42, %c2_43, %c0_44, %c0_45] : memref<2x4x4x128xf32, #tpu.memory_space<vmem>>, vector<1x1x4x128xf32>
    %57 = vector.shape_cast %56 : vector<1x1x4x128xf32> to vector<1x4x128xf32>
    %58 = vector.broadcast %51 : vector<2x1x128xf32> to vector<2x4x128xf32>
    %59 = vector.broadcast %55 : vector<1x4x128xf32> to vector<2x4x128xf32>
    %60 = arith.mulf %58, %59 : vector<2x4x128xf32>
    %61 = arith.addf %41, %60 : vector<2x4x128xf32>
    %62 = vector.broadcast %53 : vector<2x1x128xf32> to vector<2x4x128xf32>
    %63 = vector.broadcast %57 : vector<1x4x128xf32> to vector<2x4x128xf32>
    %64 = arith.mulf %62, %63 : vector<2x4x128xf32>
    %65 = arith.subf %61, %64 : vector<2x4x128xf32>
    %66 = vector.broadcast %51 : vector<2x1x128xf32> to vector<2x4x128xf32>
    %67 = vector.broadcast %57 : vector<1x4x128xf32> to vector<2x4x128xf32>
    %68 = arith.mulf %66, %67 : vector<2x4x128xf32>
    %69 = arith.addf %49, %68 : vector<2x4x128xf32>
    %70 = vector.broadcast %53 : vector<2x1x128xf32> to vector<2x4x128xf32>
    %71 = vector.broadcast %55 : vector<1x4x128xf32> to vector<2x4x128xf32>
    %72 = arith.mulf %70, %71 : vector<2x4x128xf32>
    %73 = arith.addf %69, %72 : vector<2x4x128xf32>
    %c0_46 = arith.constant 0 : index
    %c0_47 = arith.constant 0 : index
    %c3 = arith.constant 3 : index
    %c0_48 = arith.constant 0 : index
    %74 = vector.load %arg1[%c0_46, %c0_47, %c3, %c0_48] : memref<2x2x4x128xf32, #tpu.memory_space<vmem>>, vector<1x2x1x128xf32>
    %75 = vector.shape_cast %74 : vector<1x2x1x128xf32> to vector<2x1x128xf32>
    %c1_49 = arith.constant 1 : index
    %c0_50 = arith.constant 0 : index
    %c3_51 = arith.constant 3 : index
    %c0_52 = arith.constant 0 : index
    %76 = vector.load %arg1[%c1_49, %c0_50, %c3_51, %c0_52] : memref<2x2x4x128xf32, #tpu.memory_space<vmem>>, vector<1x2x1x128xf32>
    %77 = vector.shape_cast %76 : vector<1x2x1x128xf32> to vector<2x1x128xf32>
    %c0_53 = arith.constant 0 : index
    %c3_54 = arith.constant 3 : index
    %c0_55 = arith.constant 0 : index
    %c0_56 = arith.constant 0 : index
    %78 = vector.load %arg2[%c0_53, %c3_54, %c0_55, %c0_56] : memref<2x4x4x128xf32, #tpu.memory_space<vmem>>, vector<1x1x4x128xf32>
    %79 = vector.shape_cast %78 : vector<1x1x4x128xf32> to vector<1x4x128xf32>
    %c1_57 = arith.constant 1 : index
    %c3_58 = arith.constant 3 : index
    %c0_59 = arith.constant 0 : index
    %c0_60 = arith.constant 0 : index
    %80 = vector.load %arg2[%c1_57, %c3_58, %c0_59, %c0_60] : memref<2x4x4x128xf32, #tpu.memory_space<vmem>>, vector<1x1x4x128xf32>
    %81 = vector.shape_cast %80 : vector<1x1x4x128xf32> to vector<1x4x128xf32>
    %82 = vector.broadcast %75 : vector<2x1x128xf32> to vector<2x4x128xf32>
    %83 = vector.broadcast %79 : vector<1x4x128xf32> to vector<2x4x128xf32>
    %84 = arith.mulf %82, %83 : vector<2x4x128xf32>
    %85 = arith.addf %65, %84 : vector<2x4x128xf32>
    %86 = vector.broadcast %77 : vector<2x1x128xf32> to vector<2x4x128xf32>
    %87 = vector.broadcast %81 : vector<1x4x128xf32> to vector<2x4x128xf32>
    %88 = arith.mulf %86, %87 : vector<2x4x128xf32>
    %89 = arith.subf %85, %88 : vector<2x4x128xf32>
    %90 = vector.broadcast %75 : vector<2x1x128xf32> to vector<2x4x128xf32>
    %91 = vector.broadcast %81 : vector<1x4x128xf32> to vector<2x4x128xf32>
    %92 = arith.mulf %90, %91 : vector<2x4x128xf32>
    %93 = arith.addf %73, %92 : vector<2x4x128xf32>
    %94 = vector.broadcast %77 : vector<2x1x128xf32> to vector<2x4x128xf32>
    %95 = vector.broadcast %79 : vector<1x4x128xf32> to vector<2x4x128xf32>
    %96 = arith.mulf %94, %95 : vector<2x4x128xf32>
    %97 = arith.addf %93, %96 : vector<2x4x128xf32>
    %c0_61 = arith.constant 0 : index
    %c0_62 = arith.constant 0 : index
    %c0_63 = arith.constant 0 : index
    %c0_64 = arith.constant 0 : index
    %98 = vector.load %arg3[%c0_61, %c0_62, %c0_63, %c0_64] : memref<2x2x4x128xf32, #tpu.memory_space<vmem>>, vector<1x2x4x128xf32>
    %99 = vector.shape_cast %98 : vector<1x2x4x128xf32> to vector<2x4x128xf32>
    %100 = vector.shape_cast %89 : vector<2x4x128xf32> to vector<1x2x4x128xf32>
    tpu.vector_store %arg3[%c0_61, %c0_62, %c0_63, %c0_64], %100 {strides = array<i32>} : memref<2x2x4x128xf32, #tpu.memory_space<vmem>>, vector<1x2x4x128xf32>,
    %c1_65 = arith.constant 1 : index
    %c0_66 = arith.constant 0 : index
    %c0_67 = arith.constant 0 : index
    %c0_68 = arith.constant 0 : index
    %101 = vector.load %arg3[%c1_65, %c0_66, %c0_67, %c0_68] : memref<2x2x4x128xf32, #tpu.memory_space<vmem>>, vector<1x2x4x128xf32>
    %102 = vector.shape_cast %101 : vector<1x2x4x128xf32> to vector<2x4x128xf32>
    %103 = vector.shape_cast %97 : vector<2x4x128xf32> to vector<1x2x4x128xf32>
    tpu.vector_store %arg3[%c1_65, %c0_66, %c0_67, %c0_68], %103 {strides = array<i32>} : memref<2x2x4x128xf32, #tpu.memory_space<vmem>>, vector<1x2x4x128xf32>,
    return
  }
  func.func @transform_0(%arg0: i32) -> (i32, i32, i32, i32) {
    %c0_i32 = arith.constant 0 : i32
    %c0_i32_0 = arith.constant 0 : i32
    %c0_i32_1 = arith.constant 0 : i32
    %c0_i32_2 = arith.constant 0 : i32
    return %c0_i32, %c0_i32_0, %c0_i32_1, %arg0 : i32, i32, i32, i32
  }
  func.func @transform_1(%arg0: i32) -> (i32, i32, i32, i32) {
    %c0_i32 = arith.constant 0 : i32
    %c0_i32_0 = arith.constant 0 : i32
    %c0_i32_1 = arith.constant 0 : i32
    %c0_i32_2 = arith.constant 0 : i32
    return %c0_i32, %c0_i32_0, %c0_i32_1, %arg0 : i32, i32, i32, i32
  }
  func.func @transform_2(%arg0: i32) -> (i32, i32, i32, i32) {
    %c0_i32 = arith.constant 0 : i32
    %c0_i32_0 = arith.constant 0 : i32
    %c0_i32_1 = arith.constant 0 : i32
    %c0_i32_2 = arith.constant 0 : i32
    return %c0_i32, %c0_i32_0, %c0_i32_1, %arg0 : i32, i32, i32, i32
  }
}

</mosaic_0001>

<bundles_post_ra>
// kernel: _lambda_.1
= control target key start
LH: loop header
LB: loop body
LE: loop exit
PB: predicated region body
PF: predicated region fallthrough
CT: control target
= control target key end

     0   :  { %s264_s0 = inlined_call_operand.vmem [shape: f32[2,2,4,128], index: 0, kind: input, shape index: {}]   ;;  %s265_s1 = inlined_call_operand.vmem [shape: f32[2,4,4,128], index: 1, kind: input, shape index: {}]   ;;  %s266_s2 = inlined_call_operand.vmem [shape: f32[2,2,4,128], index: 2, kind: output, shape index: {}]  }
   0x1   :  { %v16_v0 = vld [vmem:[%s265_s1] sm:$0xf]  ;;  %v134_v1 = vld [vmem:[%s265_s1 + $0x10] sm:$0xf]  ;;  %v150_v3 = vld [vmem:[%s264_s0 + $0x8] ss:$0 sm:$0xff] }
   0x2   :  { %v149_v2 = vld [vmem:[%s264_s0] ss:$0 sm:$0xff]  ;;  %v137_v4 = vld [vmem:[%s265_s1 + $0x4] sm:$0xf]  ;;  %v27_v6 = vmul.f32 %v150_v3, %v134_v1  ;;  %v138_v7 = vld [vmem:[%s265_s1 + $0x14] sm:$0xf]  ;;  %v35_v11 = vmul.f32 %v150_v3, %v16_v0 }
   0x3   :  { %v21_v5 = vmul.f32 %v149_v2, %v16_v0  ;;  %v151_v8 = vld [vmem:[%s264_s0 + $0x1] ss:$0 sm:$0xff]  ;;  %v152_v9 = vld [vmem:[%s264_s0 + $0x9] ss:$0 sm:$0xff]  ;;  %v31_v10 = vmul.f32 %v149_v2, %v134_v1  ;;  %v142_v16 = vld [vmem:[%s265_s1 + $0x18] sm:$0xf] }
   0x4   :  { %v141_v12 = vld [vmem:[%s265_s1 + $0x8] sm:$0xf]  ;;  %v49_v14 = vmul.f32 %v151_v8, %v137_v4  ;;  %v55_v15 = vmul.f32 %v152_v9, %v138_v7  ;;  %v153_v17 = vld [vmem:[%s264_s0 + $0x2] ss:$0 sm:$0xff]  ;;  %v145_v20 = vld [vmem:[%s265_s1 + $0xc] sm:$0xf]  ;;  %v59_v21 = vmul.f32 %v151_v8, %v138_v7  ;;  %v63_v22 = vmul.f32 %v152_v9, %v137_v4 }
   0x5   :  { %v29_v13 = vsub.f32 %v21_v5, %v27_v6  ;;  %v154_v18 = vld [vmem:[%s264_s0 + $0xa] ss:$0 sm:$0xff]  ;;  %v37_v19 = vadd.f32 %v35_v11, %v31_v10  ;;  %v77_v24 = vmul.f32 %v153_v17, %v141_v12  ;;  %v146_v25 = vld [vmem:[%s265_s1 + $0x1c] sm:$0xf]  ;;  %v155_v26 = vld [vmem:[%s264_s0 + $0x3] ss:$0 sm:$0xff]  ;;  %v87_v30 = vmul.f32 %v153_v17, %v142_v16 }
   0x6   :  { %v156_v27 = vld [vmem:[%s264_s0 + $0xb] ss:$0 sm:$0xff]  ;;  %v157_v28 = vld [vmem:[%s264_s0 + $0x4] ss:$0 sm:$0xff]  ;;  %v83_v32 = vmul.f32 %v154_v18, %v142_v16  ;;  %v158_v33 = vld [vmem:[%s264_s0 + $0xc] ss:$0 sm:$0xff]  ;;  %v91_v38 = vmul.f32 %v154_v18, %v141_v12  ;;  %v105_v41 = vmul.f32 %v155_v26, %v145_v20  ;;  %v115_v47 = vmul.f32 %v155_v26, %v146_v25 }
   0x7   :  { %v51_v23 = vadd.f32 %v49_v14, %v29_v13  ;;  %v61_v29 = vadd.f32 %v59_v21, %v37_v19  ;;  %v22_v34 = vmul.f32 %v157_v28, %v16_v0  ;;  %v159_v35 = vld [vmem:[%s264_s0 + $0x5] ss:$0 sm:$0xff]  ;;  %v160_v36 = vld [vmem:[%s264_s0 + $0xd] ss:$0 sm:$0xff]  ;;  %v32_v39 = vmul.f32 %v157_v28, %v134_v1  ;;  %v161_v43 = vld [vmem:[%s264_s0 + $0x6] ss:$0 sm:$0xff] }
   0x8   :  { %v28_v42 = vmul.f32 %v158_v33, %v134_v1  ;;  %v36_v44 = vmul.f32 %v158_v33, %v16_v0  ;;  %v50_v45 = vmul.f32 %v159_v35, %v137_v4  ;;  %v60_v48 = vmul.f32 %v159_v35, %v138_v7  ;;  %v162_v53 = vld [vmem:[%s264_s0 + $0xe] ss:$0 sm:$0xff]  ;;  %v163_v61 = vld [vmem:[%s264_s0 + $0x7] ss:$0 sm:$0xff]  ;;  %v164_v5 = vld [vmem:[%s264_s0 + $0xf] ss:$0 sm:$0xff] }
   0x9   :  { %v57_v31 = vsub.f32 %v51_v23, %v55_v15  ;;  %v65_v37 = vadd.f32 %v63_v22, %v61_v29  ;;  %v111_v50 = vmul.f32 %v156_v27, %v146_v25  ;;  %v56_v52 = vmul.f32 %v160_v36, %v138_v7 }
   0xa   :  { %v30_v51 = vsub.f32 %v22_v34, %v28_v42  ;;  %v119_v55 = vmul.f32 %v156_v27, %v145_v20  ;;  %v38_v56 = vadd.f32 %v36_v44, %v32_v39  ;;  %v64_v57 = vmul.f32 %v160_v36, %v137_v4 }
   0xb   :  { %v79_v40 = vadd.f32 %v77_v24, %v57_v31  ;;  %v89_v46 = vadd.f32 %v87_v30, %v65_v37  ;;  %v78_v60 = vmul.f32 %v161_v43, %v141_v12  ;;  %v88_v0 = vmul.f32 %v161_v43, %v142_v16 }
   0xc   :  { %v52_v59 = vadd.f32 %v50_v45, %v30_v51  ;;  %v62_v63 = vadd.f32 %v60_v48, %v38_v56  ;;  %v84_v3 = vmul.f32 %v162_v53, %v142_v16  ;;  %v92_v4 = vmul.f32 %v162_v53, %v141_v12 }
   0xd   :  { %v85_v49 = vsub.f32 %v79_v40, %v83_v32  ;;  %v93_v54 = vadd.f32 %v91_v38, %v89_v46  ;;  %v106_v9 = vmul.f32 %v163_v61, %v145_v20  ;;  %v116_v11 = vmul.f32 %v163_v61, %v146_v25 }
   0xe   :  { %v58_v2 = vsub.f32 %v52_v59, %v56_v52  ;;  %v66_v7 = vadd.f32 %v64_v57, %v62_v63  ;;  %v112_v14 = vmul.f32 %v164_v5, %v146_v25  ;;  %v120_v16 = vmul.f32 %v164_v5, %v145_v20 }
   0xf   :  { %v107_v58 = vadd.f32 %v105_v41, %v85_v49  ;;  %v117_v62 = vadd.f32 %v115_v47, %v93_v54 }
  0x10   :  { %v80_v8 = vadd.f32 %v78_v60, %v58_v2  ;;  %v90_v10 = vadd.f32 %v88_v0, %v66_v7 }
  0x11   :  { %v113_v1 = vsub.f32 %v107_v58, %v111_v50  ;;  %v121_v6 = vadd.f32 %v119_v55, %v117_v62 }
  0x12   :  { %v86_v13 = vsub.f32 %v80_v8, %v84_v3  ;;  %v94_v15 = vadd.f32 %v92_v4, %v90_v10 }
  0x13   :  { %123 = vst [vmem:[%s266_s2] sm:$0xf] %v113_v1 }
  0x14   :  { %147 = vst [vmem:[%s266_s2 + $0x8] sm:$0xf] %v121_v6  ;;  %v108_v17 = vadd.f32 %v106_v9, %v86_v13  ;;  %v118_v18 = vadd.f32 %v116_v11, %v94_v15 }
  0x16   :  { %v114_v19 = vsub.f32 %v108_v17, %v112_v14  ;;  %v122_v12 = vadd.f32 %v120_v16, %v118_v18 }
  0x18   :  { %124 = vst [vmem:[%s266_s2 + $0x4] sm:$0xf] %v114_v19 }
  0x19   :  { %148 = vst [vmem:[%s266_s2 + $0xc] sm:$0xf] %v122_v12 }

// kernel: reverse.1
= control target key start
LH: loop header
LB: loop body
LE: loop exit
PB: predicated region body
PF: predicated region fallthrough
CT: control target
= control target key end

     0   :  { %v72_v3 = vlaneseq  ;;  %v65_v6 = vld [vmem:[#allocation0 + $0x7] ss:$-1 sm:$0xff]  ;;  %v79_v8 = vld [vmem:[#allocation0 + $0x17] ss:$-1 sm:$0xff]  ;;  %s331_s0 = inlined_call_operand.vmem [shape: f32[2,4,16,7], index: 0, kind: input, shape index: {}]   ;;  %s332_s1 = inlined_call_operand.vmem [shape: f32[2,4,16,7], index: 1, kind: output, shape index: {}]  }
   0x1   :  { %v45_v0 = vld [vmem:[%s331_s0] sm:$0xff]  ;;  %v47_v1 = vld [vmem:[%s331_s0 + $0x8] sm:$0xff]  ;;  %v49_v2 = vld [vmem:[%s331_s0 + $0x10] sm:$0xff]  ;;  %v66_v12 = vrot.slane %v65_v6, 1  ;;  %v80_v13 = vrot.slane %v79_v8, 1 }
   0x2   :  { %46 = vst [vmem:[#allocation0 + $0x8] sm:$0xff] %v45_v0  ;;  %v51_v4 = vld [vmem:[%s331_s0 + $0x18] sm:$0xff]  ;;  %v53_v5 = vld [vmem:[%s331_s0 + $0x20] sm:$0xff]  ;;  %v55_v7 = vld [vmem:[%s331_s0 + $0x28] sm:$0xff]  ;;  %v73_v10 = vshrl.u32 %v72_v3, 7 }
   0x3   :  { %48 = vst [vmem:[#allocation0 + $0x18] sm:$0xff] %v47_v1  ;;  %v57_v9 = vld [vmem:[%s331_s0 + $0x30] sm:$0xff]  ;;  %v59_v11 = vld [vmem:[%s331_s0 + $0x38] sm:$0xff]  ;;  %v93_v14 = vld [vmem:[#allocation0 + $0x27] ss:$-1 sm:$0xff] }
   0x4   :  { %50 = vst [vmem:[#allocation0 + $0x28] sm:$0xff] %v49_v2  ;;  %vm74_vm0 = vcmp.lt.s32.totalorder %v73_v10, 7  ;;  %v107_v16 = vld [vmem:[#allocation0 + $0x37] ss:$-1 sm:$0xff]  ;;  %v94_v19 = vrot.slane %v93_v14, 1 }
   0x5   :  { %52 = vst [vmem:[#allocation0 + $0x38] sm:$0xff] %v51_v4  ;;  %v121_v22 = vld [vmem:[#allocation0 + $0x47] ss:$-1 sm:$0xff]  ;;  %v108_v24 = vrot.slane %v107_v16, 1  ;;  %v135_v28 = vld [vmem:[#allocation0 + $0x57] ss:$-1 sm:$0xff] }
   0x6   :  { %54 = vst [vmem:[#allocation0 + $0x48] sm:$0xff] %v53_v5  ;;  %v122_v29 = vrot.slane %v121_v22, 1  ;;  %v149_v32 = vld [vmem:[#allocation0 + $0x67] ss:$-1 sm:$0xff]  ;;  %v136_v33 = vrot.slane %v135_v28, 1 }
   0x7   :  { %56 = vst [vmem:[#allocation0 + $0x58] sm:$0xff] %v55_v7  ;;  %v163_v36 = vld [vmem:[#allocation0 + $0x77] ss:$-1 sm:$0xff]  ;;  %v150_v37 = vrot.slane %v149_v32, 1 }
   0x8   :  { %58 = vst [vmem:[#allocation0 + $0x68] sm:$0xff] %v57_v9  ;;  %v164_v40 = vrot.slane %v163_v36, 1 }
   0x9   :  { %60 = vst [vmem:[#allocation0 + $0x78] sm:$0xff] %v59_v11  ;;  %v70_v15 = vld [vmem:[#allocation0 + $0xf] ss:$-1 sm:$0xff] }
   0xa   :  { %67 = vst [vmem:[#allocation1] sm:$0xff] %v66_v12  ;;  %v71_v17 = vrot.slane %v70_v15, 1  ;;  %v84_v18 = vld [vmem:[#allocation0 + $0x1f] ss:$-1 sm:$0xff] }
   0xb   :  { %81 = vst [vmem:[#allocation1 + $0x8] sm:$0xff] %v80_v13  ;;  %v85_v20 = vrot.slane %v84_v18, 1  ;;  %v98_v21 = vld [vmem:[#allocation0 + $0x2f] ss:$-1 sm:$0xff] }
   0xc   :  { %75 = vst.msk [vmem:[#allocation1] sm:$0xff] %vm74_vm0, %v71_v17  ;;  %v99_v23 = vrot.slane %v98_v21, 1  ;;  %v112_v25 = vld [vmem:[#allocation0 + $0x3f] ss:$-1 sm:$0xff] }
   0xd   :  { %89 = vst.msk [vmem:[#allocation1 + $0x8] sm:$0xff] %vm74_vm0, %v85_v20  ;;  %v113_v26 = vrot.slane %v112_v25, 1  ;;  %v126_v27 = vld [vmem:[#allocation0 + $0x4f] ss:$-1 sm:$0xff] }
   0xe   :  { %95 = vst [vmem:[#allocation1 + $0x10] sm:$0xff] %v94_v19  ;;  %v140_v30 = vld [vmem:[#allocation0 + $0x5f] ss:$-1 sm:$0xff]  ;;  %v127_v31 = vrot.slane %v126_v27, 1 }
   0xf   :  { %103 = vst.msk [vmem:[#allocation1 + $0x10] sm:$0xff] %vm74_vm0, %v99_v23  ;;  %v154_v34 = vld [vmem:[#allocation0 + $0x6f] ss:$-1 sm:$0xff]  ;;  %v141_v35 = vrot.slane %v140_v30, 1 }
  0x10   :  { %109 = vst [vmem:[#allocation1 + $0x18] sm:$0xff] %v108_v24  ;;  %v168_v38 = vld [vmem:[#allocation0 + $0x7f] ss:$-1 sm:$0xff]  ;;  %v155_v39 = vrot.slane %v154_v34, 1 }
  0x11   :  { %117 = vst.msk [vmem:[#allocation1 + $0x18] sm:$0xff] %vm74_vm0, %v113_v26  ;;  %v169_v41 = vrot.slane %v168_v38, 1 }
  0x12   :  { %123 = vst [vmem:[#allocation1 + $0x20] sm:$0xff] %v122_v29 }
  0x13   :  { %131 = vst.msk [vmem:[#allocation1 + $0x20] sm:$0xff] %vm74_vm0, %v127_v31  ;;  %v216_v42 = vld [vmem:[#allocation1] sm:$0xff] }
  0x14   :  { %137 = vst [vmem:[#allocation1 + $0x28] sm:$0xff] %v136_v33  ;;  %v218_v43 = vld [vmem:[#allocation1 + $0x8] sm:$0xff] }
  0x15   :  { %145 = vst.msk [vmem:[#allocation1 + $0x28] sm:$0xff] %vm74_vm0, %v141_v35 }
  0x16   :  { %151 = vst [vmem:[#allocation1 + $0x30] sm:$0xff] %v150_v37  ;;  %v220_v44 = vld [vmem:[#allocation1 + $0x10] sm:$0xff] }
  0x17   :  { %159 = vst.msk [vmem:[#allocation1 + $0x30] sm:$0xff] %vm74_vm0, %v155_v39 }
  0x18   :  { %165 = vst [vmem:[#allocation1 + $0x38] sm:$0xff] %v164_v40  ;;  %v222_v45 = vld [vmem:[#allocation1 + $0x18] sm:$0xff] }
  0x19   :  { %173 = vst.msk [vmem:[#allocation1 + $0x38] sm:$0xff] %vm74_vm0, %v169_v41 }
  0x1a   :  { %217 = vst [vmem:[%s332_s1] sm:$0xff] %v216_v42  ;;  %v224_v46 = vld [vmem:[#allocation1 + $0x20] sm:$0xff] }
  0x1b   :  { %219 = vst [vmem:[%s332_s1 + $0x8] sm:$0xff] %v218_v43 }
  0x1c   :  { %221 = vst [vmem:[%s332_s1 + $0x10] sm:$0xff] %v220_v44  ;;  %v226_v47 = vld [vmem:[#allocation1 + $0x28] sm:$0xff] }
  0x1d   :  { %223 = vst [vmem:[%s332_s1 + $0x18] sm:$0xff] %v222_v45 }
  0x1e   :  { %225 = vst [vmem:[%s332_s1 + $0x20] sm:$0xff] %v224_v46  ;;  %v228_v48 = vld [vmem:[#allocation1 + $0x30] sm:$0xff] }
  0x1f   :  { %227 = vst [vmem:[%s332_s1 + $0x28] sm:$0xff] %v226_v47 }
  0x20   :  { %229 = vst [vmem:[%s332_s1 + $0x30] sm:$0xff] %v228_v48  ;;  %v230_v49 = vld [vmem:[#allocation1 + $0x38] sm:$0xff] }
  0x21   :  { %231 = vst [vmem:[%s332_s1 + $0x38] sm:$0xff] %v230_v49 }

</bundles_post_ra>
